<compile_context>
chip_gen: v7x
topology: tpu7x:2x2x1
jax: 0.10.0
libtpu: 0.0.40
codegen_flags: <defaults>
</compile_context>

<pallas_src>
import jax
import jax.numpy as jnp
from jax.experimental import pallas as pl
from jax.experimental.pallas import tpu as pltpu

NEG_SLOPE = 0.01        # torch.nn.LeakyReLU default negative_slope
LANE = 128              # TPU lane width
DEFAULT_TILE_N = 1024   # batch rows per grid step (multiple of LANE)


def _leaky_relu(x):
    # For 0 < slope < 1, max(x, slope*x) == leaky_relu(x); avoids cmp+select.
    return jnp.maximum(x, NEG_SLOPE * x)


def mlp_kernel(x_ref, w1_ref, b1_ref, w2_ref, b2_ref, w3_ref, b3_ref, o_ref):
    # x_ref: (6, TILE_N) -- batch on the lane axis (lane-dense).
    # w*: PyTorch (out, in) layout; b*: (out, 1) columns (broadcast over lanes).
    x = x_ref[...]
    h1 = _leaky_relu(
        jnp.dot(w1_ref[...], x, preferred_element_type=jnp.float32) + b1_ref[...])
    h2 = _leaky_relu(
        jnp.dot(w2_ref[...], h1, preferred_element_type=jnp.float32) + b2_ref[...])
    y = jnp.dot(w3_ref[...], h2, preferred_element_type=jnp.float32) + b3_ref[...]
    o_ref[...] = y.astype(o_ref.dtype)


def _round_up(v, m):
    return ((v + m - 1) // m) * m


def net_forward(x, params, tile_n=DEFAULT_TILE_N):
    """x: (N, 6) float32; params in PyTorch layout. Returns (N, 6) float32."""
    w1, b1, w2, b2, w3, b3 = params
    n, d_in = x.shape
    d_out = w3.shape[0]

    # Effective batch tile: lane-dense multiple of 128, no bigger than needed.
    eff_tile = min(tile_n, _round_up(max(n, 1), LANE))
    n_pad = _round_up(n, eff_tile)
    grid = (n_pad // eff_tile,)

    # Feature-major layout: batch goes on the lane axis; pad batch to tile size.
    xt = jnp.pad(x.T, ((0, 0), (0, n_pad - n)))

    # Full-array blocks with constant index_map -> weights resident across steps.
    def resident(a):
        return pl.BlockSpec(a.shape, lambda i: (0,) * a.ndim)

    out_t = pl.pallas_call(
        mlp_kernel,
        out_shape=jax.ShapeDtypeStruct((d_out, n_pad), x.dtype),
        grid=grid,
        in_specs=[
            pl.BlockSpec((d_in, eff_tile), lambda i: (0, i)),   # x tile
            resident(w1), resident(b1),
            resident(w2), resident(b2),
            resident(w3), resident(b3),
        ],
        out_specs=pl.BlockSpec((d_out, eff_tile), lambda i: (0, i)),
        compiler_params=pltpu.CompilerParams(
            dimension_semantics=("parallel",)),
    )(xt, w1, b1, w2, b2, w3, b3)

    # Drop batch padding and return row-major (N, 6) like the PyTorch module.
    return out_t[:, :n].T


def init_params(key):
    """Deterministic parameter init (PyTorch nn.Linear uniform bounds),
    stored in PyTorch layout: W (out, in), b as (out, 1) column."""
    def linear_init(k, fan_in, fan_out):
        k_w, k_b = jax.random.split(k)
        bound = 1.0 / float(fan_in) ** 0.5
        w = jax.random.uniform(k_w, (fan_out, fan_in), jnp.float32, -bound, bound)
        b = jax.random.uniform(k_b, (fan_out, 1), jnp.float32, -bound, bound)
        return w, b

    k1, k2, k3 = jax.random.split(key, 3)
    w1, b1 = linear_init(k1, 6, 100)
    w2, b2 = linear_init(k2, 100, 50)
    w3, b3 = linear_init(k3, 50, 6)
    return (w1, b1, w2, b2, w3, b3)


def reference_forward(x, params):
    w1, b1, w2, b2, w3, b3 = params
    h1 = _leaky_relu(x @ w1.T + b1.T)
    h2 = _leaky_relu(h1 @ w2.T + b2.T)
    return h2 @ w3.T + b3.T


if __name__ == "__main__":
    key = jax.random.PRNGKey(0)
    k_x, k_p = jax.random.split(key)

    # Small deterministic batch of 6-dim pose vectors (stands in for trainPose.npy).
    x = jax.random.normal(k_x, (8, 6), dtype=jnp.float32)
    params = init_params(k_p)

    out = net_forward(x, params)
    out = jax.block_until_ready(out)

    ref = reference_forward(x, params)
    assert out.shape == (8, 6)
    assert jnp.allclose(out, ref, atol=1e-4, rtol=1e-4), float(
        jnp.max(jnp.abs(out - ref)))

    print("KERNEL_OK")
</pallas_src>

<mosaic_0001>
module attributes {stable_mosaic.version = 11 : i64} {
  func.func @mlp_kernel(%arg0: i32, %arg1: memref<6x128xf32, #tpu.memory_space<vmem>>, %arg2: memref<100x6xf32, #tpu.memory_space<vmem>>, %arg3: memref<100x1xf32, #tpu.memory_space<vmem>>, %arg4: memref<50x100xf32, #tpu.memory_space<vmem>>, %arg5: memref<50x1xf32, #tpu.memory_space<vmem>>, %arg6: memref<6x50xf32, #tpu.memory_space<vmem>>, %arg7: memref<6x1xf32, #tpu.memory_space<vmem>>, %arg8: memref<6x128xf32, #tpu.memory_space<vmem>>) attributes {dimension_semantics = [#tpu.dimension_semantics<parallel>], iteration_bounds = array<i64: 1>, scalar_prefetch = 0 : i64, scratch_operands = 0 : i64, tpu.core_type = #tpu.core_type<tc>, window_params = [{transform_indices = @transform_0, window_bounds = array<i64: 6, 128>}, {pipeline_mode = #tpu.pipeline_mode<synchronous>, transform_indices = @transform_1, window_bounds = array<i64: 100, 6>}, {pipeline_mode = #tpu.pipeline_mode<synchronous>, transform_indices = @transform_2, window_bounds = array<i64: 100, 1>}, {pipeline_mode = #tpu.pipeline_mode<synchronous>, transform_indices = @transform_3, window_bounds = array<i64: 50, 100>}, {pipeline_mode = #tpu.pipeline_mode<synchronous>, transform_indices = @transform_4, window_bounds = array<i64: 50, 1>}, {pipeline_mode = #tpu.pipeline_mode<synchronous>, transform_indices = @transform_5, window_bounds = array<i64: 6, 50>}, {pipeline_mode = #tpu.pipeline_mode<synchronous>, transform_indices = @transform_6, window_bounds = array<i64: 6, 1>}, {transform_indices = @transform_7, window_bounds = array<i64: 6, 128>}]} {
    %c0 = arith.constant 0 : index
    %c0_0 = arith.constant 0 : index
    %0 = vector.load %arg1[%c0, %c0_0] : memref<6x128xf32, #tpu.memory_space<vmem>>, vector<6x128xf32>
    %c0_1 = arith.constant 0 : index
    %c0_2 = arith.constant 0 : index
    %1 = vector.load %arg2[%c0_1, %c0_2] : memref<100x6xf32, #tpu.memory_space<vmem>>, vector<100x6xf32>
    %cst = arith.constant dense<0.000000e+00> : vector<100x128xf32>
    %2 = tpu.matmul %1, %0, %cst {dimension_numbers = #tpu.dot_dimension_numbers<[1], [0], [0], [1], [0, 0, 1, 1], [], []>} : vector<100x6xf32>, vector<6x128xf32>, vector<100x128xf32> -> vector<100x128xf32>
    %c0_3 = arith.constant 0 : index
    %c0_4 = arith.constant 0 : index
    %3 = vector.load %arg3[%c0_3, %c0_4] : memref<100x1xf32, #tpu.memory_space<vmem>>, vector<100x1xf32>
    %4 = vector.broadcast %3 : vector<100x1xf32> to vector<100x128xf32>
    %5 = arith.addf %2, %4 : vector<100x128xf32>
    %cst_5 = arith.constant 0.00999999977 : f32
    %6 = vector.broadcast %cst_5 : f32 to vector<100x128xf32>
    %7 = arith.mulf %6, %5 : vector<100x128xf32>
    %8 = arith.maximumf %5, %7 : vector<100x128xf32>
    %c0_6 = arith.constant 0 : index
    %c0_7 = arith.constant 0 : index
    %9 = vector.load %arg4[%c0_6, %c0_7] : memref<50x100xf32, #tpu.memory_space<vmem>>, vector<50x100xf32>
    %cst_8 = arith.constant dense<0.000000e+00> : vector<50x128xf32>
    %10 = tpu.matmul %9, %8, %cst_8 {dimension_numbers = #tpu.dot_dimension_numbers<[1], [0], [0], [1], [0, 0, 1, 1], [], []>} : vector<50x100xf32>, vector<100x128xf32>, vector<50x128xf32> -> vector<50x128xf32>
    %c0_9 = arith.constant 0 : index
    %c0_10 = arith.constant 0 : index
    %11 = vector.load %arg5[%c0_9, %c0_10] : memref<50x1xf32, #tpu.memory_space<vmem>>, vector<50x1xf32>
    %12 = vector.broadcast %11 : vector<50x1xf32> to vector<50x128xf32>
    %13 = arith.addf %10, %12 : vector<50x128xf32>
    %cst_11 = arith.constant 0.00999999977 : f32
    %14 = vector.broadcast %cst_11 : f32 to vector<50x128xf32>
    %15 = arith.mulf %14, %13 : vector<50x128xf32>
    %16 = arith.maximumf %13, %15 : vector<50x128xf32>
    %c0_12 = arith.constant 0 : index
    %c0_13 = arith.constant 0 : index
    %17 = vector.load %arg6[%c0_12, %c0_13] : memref<6x50xf32, #tpu.memory_space<vmem>>, vector<6x50xf32>
    %cst_14 = arith.constant dense<0.000000e+00> : vector<6x128xf32>
    %18 = tpu.matmul %17, %16, %cst_14 {dimension_numbers = #tpu.dot_dimension_numbers<[1], [0], [0], [1], [0, 0, 1, 1], [], []>} : vector<6x50xf32>, vector<50x128xf32>, vector<6x128xf32> -> vector<6x128xf32>
    %c0_15 = arith.constant 0 : index
    %c0_16 = arith.constant 0 : index
    %19 = vector.load %arg7[%c0_15, %c0_16] : memref<6x1xf32, #tpu.memory_space<vmem>>, vector<6x1xf32>
    %20 = vector.broadcast %19 : vector<6x1xf32> to vector<6x128xf32>
    %21 = arith.addf %18, %20 : vector<6x128xf32>
    %c0_17 = arith.constant 0 : index
    %c0_18 = arith.constant 0 : index
    %22 = vector.load %arg8[%c0_17, %c0_18] : memref<6x128xf32, #tpu.memory_space<vmem>>, vector<6x128xf32>
    tpu.vector_store %arg8[%c0_17, %c0_18], %21 {strides = array<i32>} : memref<6x128xf32, #tpu.memory_space<vmem>>, vector<6x128xf32>,
    return
  }
  func.func @transform_0(%arg0: i32) -> (i32, i32) {
    %c0_i32 = arith.constant 0 : i32
    %c0_i32_0 = arith.constant 0 : i32
    return %c0_i32, %arg0 : i32, i32
  }
  func.func @transform_1(%arg0: i32) -> (i32, i32) {
    %c0_i32 = arith.constant 0 : i32
    %c0_i32_0 = arith.constant 0 : i32
    %c0_i32_1 = arith.constant 0 : i32
    return %c0_i32, %c0_i32_0 : i32, i32
  }
  func.func @transform_2(%arg0: i32) -> (i32, i32) {
    %c0_i32 = arith.constant 0 : i32
    %c0_i32_0 = arith.constant 0 : i32
    %c0_i32_1 = arith.constant 0 : i32
    return %c0_i32, %c0_i32_0 : i32, i32
  }
  func.func @transform_3(%arg0: i32) -> (i32, i32) {
    %c0_i32 = arith.constant 0 : i32
    %c0_i32_0 = arith.constant 0 : i32
    %c0_i32_1 = arith.constant 0 : i32
    return %c0_i32, %c0_i32_0 : i32, i32
  }
  func.func @transform_4(%arg0: i32) -> (i32, i32) {
    %c0_i32 = arith.constant 0 : i32
    %c0_i32_0 = arith.constant 0 : i32
    %c0_i32_1 = arith.constant 0 : i32
    return %c0_i32, %c0_i32_0 : i32, i32
  }
  func.func @transform_5(%arg0: i32) -> (i32, i32) {
    %c0_i32 = arith.constant 0 : i32
    %c0_i32_0 = arith.constant 0 : i32
    %c0_i32_1 = arith.constant 0 : i32
    return %c0_i32, %c0_i32_0 : i32, i32
  }
  func.func @transform_6(%arg0: i32) -> (i32, i32) {
    %c0_i32 = arith.constant 0 : i32
    %c0_i32_0 = arith.constant 0 : i32
    %c0_i32_1 = arith.constant 0 : i32
    return %c0_i32, %c0_i32_0 : i32, i32
  }
  func.func @transform_7(%arg0: i32) -> (i32, i32) {
    %c0_i32 = arith.constant 0 : i32
    %c0_i32_0 = arith.constant 0 : i32
    return %c0_i32, %arg0 : i32, i32
  }
}

</mosaic_0001>

<bundles_post_ra>
// kernel: tpu_custom_call.1
= control target key start
LH: loop header
LB: loop body
LE: loop exit
PB: predicated region body
PF: predicated region fallthrough
CT: control target
= control target key end

     0   :  { %vm159_vm0 = vcmask 1045504   ;;  %v837_v2 = vmov 0.0   ;;  %vm838_vm1 = vmmov 0   ;;  %vm119_vm2 = vcmask 48128   ;;  %s1097_s0 = inlined_call_operand.vmem [shape: f32[6,128], index: 0, kind: input, shape index: {}]   ;;  %s1098_s1 = inlined_call_operand.vmem [shape: f32[100,6], index: 1, kind: input, shape index: {}]   ;;  %s1099_s2 = inlined_call_operand.vmem [shape: f32[100,1], index: 2, kind: input, shape index: {}]   ;;  %s1100_s3 = inlined_call_operand.vmem [shape: f32[50,100], index: 3, kind: input, shape index: {}]   ;;  %s1101_s4 = inlined_call_operand.vmem [shape: f32[50,1], index: 4, kind: input, shape index: {}]   ;;  %s1102_s5 = inlined_call_operand.vmem [shape: f32[6,50], index: 5, kind: input, shape index: {}]   ;;  %s1103_s6 = inlined_call_operand.vmem [shape: f32[6,1], index: 6, kind: input, shape index: {}]   ;;  %s1104_s7 = inlined_call_operand.hbm [shape: f32[6,128], index: 7, kind: output, shape index: {}]  }
   0x1   :  { %v27_v0 = vld [vmem:[%s1097_s0] sm:$0x3f]  ;;  %674 = vmatprep.subr.mxu0 %v837_v2  ;;  %676 = vmatprep.mubr.msk.f32.mxu0 %vm838_vm1, %v837_v2  ;;  %v839_v3 = vmov 0   ;;  %v29_v4 = vld [vmem:[%s1098_s1 + $0x8] sm:$0xff]  ;;  %v43_v6 = vld [vmem:[%s1099_s2 + $0x10] sm:$0xff] }
   0x2   :  { %v28_v1 = vld [vmem:[%s1098_s1] sm:$0xff]  ;;  %675 = vmatpush3.msk.msra.mxu0 %vm159_vm0, %v27_v0  ;;  %811 = vset.pattern.permute.xlu0 %v839_v3  ;;  %v42_v7 = vld [vmem:[%s1099_s2 + $0x8] sm:$0xff]  ;;  %v44_v8 = vld [vmem:[%s1099_s2 + $0x18] sm:$0xff] }
   0x3   :  { %677 = vmatmul.mubr.msk.f32.vlgmr.msra.gmra.mrb[0].mxu0 %vm119_vm2, %v28_v1  ;;  %812 = vset.pattern.permute.xlu1 %v839_v3  ;;  %v41_v5 = vld [vmem:[%s1099_s2] sm:$0xff]  ;;  %v30_v9 = vld [vmem:[%s1098_s1 + $0x10] sm:$0xff]  ;;  %v46_v11 = vld [vmem:[%s1099_s2 + $0x28] sm:$0xff] }
   0x4   :  { %679 = vmatprep.mubr.msk.f32.mxu0 %vm838_vm1, %v837_v2  ;;  %741 = vmatprep.mubr.msk.f32.mxu1 %vm838_vm1, %v837_v2  ;;  %v45_v10 = vld [vmem:[%s1099_s2 + $0x20] sm:$0xff]  ;;  %v31_v12 = vld [vmem:[%s1098_s1 + $0x18] sm:$0xff] }
   0x5   :  { %56 = vperm.xlu0 %811, %v41_v5   ;;  %66 = vperm.xlu1 %812, %v43_v6  }
   0x7   :  { %680 = vmatmul.mubr.msk.f32.gmra.mrb[2].mxu0 %vm119_vm2, %v29_v4 }
   0x8   :  { %682 = vmatprep.mubr.msk.f32.mxu0 %vm838_vm1, %v837_v2 }
   0x9   :  { %61 = vperm.xlu0 %811, %v42_v7   ;;  %71 = vperm.xlu1 %812, %v44_v8  }
   0xb   :  { %683 = vmatmul.mubr.msk.f32.gmra.mrb[4].mxu0 %vm119_vm2, %v30_v9 }
   0xc   :  { %685 = vmatprep.mubr.msk.f32.mxu0 %vm838_vm1, %v837_v2 }
   0xd   :  { %12 = vsyncpa [#allocation3], 0  ;;  %76 = vperm.xlu0 %811, %v45_v10   ;;  %81 = vperm.xlu1 %812, %v46_v11   ;;  %v47_v13 = vld [vmem:[%s1099_s2 + $0x30] sm:$0xff]  ;;  %v48_v14 = vld [vmem:[%s1099_s2 + $0x38] sm:$0xff]  ;;  %v840_v37 = vmov 0.0|0.0   ;;  %vm390_vm3 = vcmask 1043456  }
   0xe   :  { %v32_v15 = vld [vmem:[%s1098_s1 + $0x20] sm:$0xff]  ;;  %v50_v17 = vld [vmem:[%s1099_s2 + $0x48] sm:$0xff]  ;;  %v51_v19 = vld [vmem:[%s1099_s2 + $0x50] sm:$0xff]  ;;  %779 = vmatprep.subr.bf16.mxu1 %v840_v37  ;;  %797 = vmatprep.subr.bf16.mxu0 %v840_v37  ;;  %vm368_vm4 = vcmask 818176   ;;  %vm519_vm5 = vcmask 1041408   ;;  %vm515_vm6 = vcmask 408576  }
   0xf   :  { %686 = vmatmul.mubr.msk.f32.gmra.mrb[6].mxu0 %vm119_vm2, %v31_v12  ;;  %v49_v16 = vld [vmem:[%s1099_s2 + $0x40] sm:$0xff]  ;;  %v33_v18 = vld [vmem:[%s1098_s1 + $0x28] sm:$0xff]  ;;  %v52_v20 = vld [vmem:[%s1099_s2 + $0x58] sm:$0xff]  ;;  %s841_s8 = smov [#allocation2]  }
  0x10   :  { %688 = vmatprep.mubr.msk.f32.mxu0 %vm838_vm1, %v837_v2  ;;  %v34_v21 = vld [vmem:[%s1098_s1 + $0x30] sm:$0xff]  ;;  %v53_v22 = vld [vmem:[%s1099_s2 + $0x60] sm:$0xf]  ;;  %v35_v24 = vld [vmem:[%s1098_s1 + $0x38] sm:$0xff]  ;;  %s600_s9 = sshll.u32 %s841_s8, 4  ;;  %s601_s9 = int_to_ptr.vmem [resolvable:$true] %s600_s9 }
  0x11   :  { %86 = vperm.xlu0 %811, %v47_v13   ;;  %91 = vperm.xlu1 %812, %v48_v14   ;;  %v326_v23 = vld [vmem:[%s1101_s4] sm:$0xff]  ;;  %v327_v25 = vld [vmem:[%s1101_s4 + $0x8] sm:$0xff]  ;;  %v328_v26 = vld [vmem:[%s1101_s4 + $0x10] sm:$0xff]  ;;  %s813_s10 = scalar_lea.vmem %s601_s9, 128  ;;  %p818_p1 = scmp.lt.s32.totalorder %s601_s9, %s601_s9 }
  0x12   :  { %v36_v27 = vld [vmem:[%s1098_s1 + $0x40] sm:$0xff]  ;;  %v329_v28 = vld [vmem:[%s1101_s4 + $0x18] sm:$0xff]  ;;  %v37_v30 = vld [vmem:[%s1098_s1 + $0x48] sm:$0xff]  ;;  %p814_p0 = scmp.ne.s32.totalorder %s601_s9, %s813_s10  ;;  %p819_p2 = scmp.lt.s32.totalorder %s813_s10, %s813_s10 }
  0x13   :  { %689 = vmatmul.mubr.msk.f32.gmra.mrb[8].mxu0 %vm119_vm2, %v32_v15  ;;  %v330_v29 = vld [vmem:[%s1101_s4 + $0x20] sm:$0xff]  ;;  %v331_v31 = vld [vmem:[%s1101_s4 + $0x28] sm:$0xff]  ;;  %v332_v32 = vld [vmem:[%s1101_s4 + $0x30] sm:$0x3] }
  0x14   :  { %691 = vmatprep.mubr.msk.f32.mxu0 %vm838_vm1, %v837_v2  ;;  %v38_v33 = vld [vmem:[%s1098_s1 + $0x50] sm:$0xff]  ;;  %v509_v34 = vld [vmem:[%s1103_s6] sm:$0x3f]  ;;  %v39_v35 = vld [vmem:[%s1098_s1 + $0x58] sm:$0xff]  ;;  %p820_p3 = por %p819_p2, %p818_p1 }
  0x15   :  { %96 = vperm.xlu0 %811, %v49_v16   ;;  %101 = vperm.xlu1 %812, %v50_v17   ;;  %v40_v36 = vld [vmem:[%s1098_s1 + $0x60] sm:$0xf] }
  0x16   :  { %p821_p4 = pnand %p820_p3, %p814_p0 }
  0x17   :  { %692 = vmatmul.mubr.msk.f32.gmra.mrb[10].mxu0 %vm119_vm2, %v33_v18 }
  0x18   :  { %694 = vmatprep.mubr.msk.f32.mxu0 %vm838_vm1, %v837_v2 }
  0x19   :  { %106 = vperm.xlu0 %811, %v51_v19   ;;  %111 = vperm.xlu1 %812, %v52_v20  }
  0x1b   :  { %695 = vmatmul.mubr.msk.f32.gmra.mrb[12].mxu0 %vm119_vm2, %v34_v21 }
  0x1c   :  { %697 = vmatprep.mubr.msk.f32.mxu0 %vm838_vm1, %v837_v2 }
  0x1d   :  { %116 = vperm.xlu0 %811, %v53_v22   ;;  %335 = vperm.xlu1 %812, %v326_v23  }
  0x1f   :  { %698 = vmatmul.mubr.msk.f32.gmra.mrb[14].mxu0 %vm119_vm2, %v35_v24 }
  0x20   :  { %700 = vmatprep.mubr.msk.f32.mxu0 %vm838_vm1, %v837_v2 }
  0x21   :  { %340 = vperm.xlu0 %811, %v327_v25   ;;  %345 = vperm.xlu1 %812, %v328_v26  }
  0x23   :  { %701 = vmatmul.mubr.msk.f32.gmra.mrb[16].mxu0 %vm119_vm2, %v36_v27 }
  0x24   :  { %703 = vmatprep.mubr.msk.f32.mxu0 %vm838_vm1, %v837_v2 }
  0x25   :  { %350 = vperm.xlu0 %811, %v329_v28   ;;  %355 = vperm.xlu1 %812, %v330_v29  }
  0x27   :  { %704 = vmatmul.mubr.msk.f32.gmra.mrb[18].mxu0 %vm119_vm2, %v37_v30 }
  0x28   :  { %706 = vmatprep.mubr.msk.f32.mxu0 %vm838_vm1, %v837_v2 }
  0x29   :  { %360 = vperm.xlu0 %811, %v331_v31   ;;  %365 = vperm.xlu1 %812, %v332_v32  }
  0x2b   :  { %707 = vmatmul.mubr.msk.f32.gmra.mrb[20].mxu0 %vm119_vm2, %v38_v33 }
  0x2c   :  { %709 = vmatprep.mubr.msk.f32.mxu0 %vm838_vm1, %v837_v2 }
  0x2d   :  { %512 = vperm.xlu0 %811, %v509_v34  }
  0x2f   :  { %710 = vmatmul.mubr.msk.f32.gmra.mrb[22].mxu0 %vm119_vm2, %v39_v35 }
  0x30   :  { %712 = vmatprep.mubr.msk.f32.mxu0 %vm838_vm1, %v837_v2 }
  0x33   :  { %713 = vmatmul.mubr.msk.f32.gmra.mrb[24].mxu0 %vm119_vm2, %v40_v36 }
  0x34   :  { %776 = vmatprep.mubr.msk.f32.mxu0 %vm838_vm1, %v837_v2 }
  0x84   :  { %v57_v38 = vpop.permute.xlu0 %56  ;;  %v67_v47 = vpop.permute.xlu1 %66 }
  0x88   :  { %v62_v42 = vpop.permute.xlu0 %61  ;;  %v72_v55 = vpop.permute.xlu1 %71 }
  0x8c   :  { %v77_v61 = vpop.permute.xlu0 %76  ;;  %v82_v5 = vpop.permute.xlu1 %81 }
  0x90   :  { %v87_v11 = vpop.permute.xlu0 %86  ;;  %v92_v18 = vpop.permute.xlu1 %91 }
  0x94   :  { %v97_v24 = vpop.permute.xlu0 %96  ;;  %v102_v31 = vpop.permute.xlu1 %101 }
  0xd6   :  { %v229_v39 = vpop.f32.mrb[0].mxu0 }
  0xd7   :  { %v230_v40 = vadd.f32 %v229_v39, %v57_v38  ;;  %v678_v41 = vpop.f32.mrb[1].mxu0  ;;  %v107_v38 = vpop.permute.xlu0 %106 }
  0xd9   :  { %v293_v44 = vmul.f32 0.01, %v230_v40 }
  0xda   :  { %v234_v43 = vpop.f32.mrb[2].mxu0 }
  0xdb   :  { %v235_v45 = vadd.f32 %v234_v43, %v62_v42  ;;  %v681_v46 = vpop.f32.mrb[3].mxu0  ;;  %v306_v50 = vmax.f32 %v230_v40, %v293_v44 }
  0xdd   :  { %v294_v48 = vmul.f32 0.01, %v235_v45 }
  0xde   :  { %v239_v49 = vpop.f32.mrb[4].mxu0 }
  0xdf   :  { %v307_v51 = vmax.f32 %v235_v45, %v294_v48  ;;  %v240_v52 = vadd.f32 %v239_v49, %v67_v47  ;;  %v684_v53 = vpop.f32.mrb[5].mxu0  ;;  %v112_v45 = vpop.permute.xlu1 %111 }
  0xe1   :  { %v780_v54 = vpack.c.bf16 %v307_v51, %v306_v50  ;;  %v295_v57 = vmul.f32 0.01, %v240_v52  ;;  %v117_v51 = vpop.permute.xlu0 %116 }
  0xe2   :  { %v244_v56 = vpop.f32.mrb[6].mxu0 }
  0xe3   :  { %v245_v58 = vadd.f32 %v244_v56, %v72_v55  ;;  %v687_v59 = vpop.f32.mrb[7].mxu0  ;;  %781 = vmatpush3.bf16.msra.mxu1 %v780_v54  ;;  %v308_v63 = vmax.f32 %v240_v52, %v295_v57 }
  0xe4   :  { %782 = vmatprep.subr.bf16.mxu1 %v840_v37 }
  0xe5   :  { %v296_v60 = vmul.f32 0.01, %v245_v58 }
  0xe6   :  { %v249_v62 = vpop.f32.mrb[8].mxu0 }
  0xe7   :  { %v309_v0 = vmax.f32 %v245_v58, %v296_v60  ;;  %v250_v1 = vadd.f32 %v249_v62, %v77_v61  ;;  %v690_v3 = vpop.f32.mrb[9].mxu0  ;;  %v319_v60 = vld [vmem:[%s1100_s3] sm:$0xff]  ;;  %v320_v61 = vld [vmem:[%s1100_s3 + $0x8] sm:$0xff]  ;;  %v321_v62 = vld [vmem:[%s1100_s3 + $0x10] sm:$0xff] }
  0xe8   :  { %v325_v3 = vld [vmem:[%s1100_s3 + $0x30] sm:$0x3] }
  0xe9   :  { %v783_v4 = vpack.c.bf16 %v309_v0, %v308_v63  ;;  %v297_v7 = vmul.f32 0.01, %v250_v1  ;;  %v322_v63 = vld [vmem:[%s1100_s3 + $0x18] sm:$0xff]  ;;  %v323_v0 = vld [vmem:[%s1100_s3 + $0x20] sm:$0xff] }
  0xea   :  { %v254_v6 = vpop.f32.mrb[10].mxu0 }
  0xeb   :  { %v255_v8 = vadd.f32 %v254_v6, %v82_v5  ;;  %v693_v9 = vpop.f32.mrb[11].mxu0  ;;  %784 = vmatpush3.bf16.msra.mxu1 %v783_v4  ;;  %v310_v13 = vmax.f32 %v250_v1, %v297_v7  ;;  %v324_v1 = vld [vmem:[%s1100_s3 + $0x28] sm:$0xff]  ;;  %v336_v4 = vpop.permute.xlu1 %335 }
  0xec   :  { %785 = vmatprep.subr.bf16.mxu1 %v840_v37 }
  0xed   :  { %v298_v10 = vmul.f32 0.01, %v255_v8 }
  0xee   :  { %v259_v12 = vpop.f32.mrb[12].mxu0 }
  0xef   :  { %v311_v14 = vmax.f32 %v255_v8, %v298_v10  ;;  %v260_v15 = vadd.f32 %v259_v12, %v87_v11  ;;  %v696_v16 = vpop.f32.mrb[13].mxu0  ;;  %v341_v8 = vpop.permute.xlu0 %340 }
  0xf1   :  { %v786_v17 = vpack.c.bf16 %v311_v14, %v310_v13  ;;  %v299_v20 = vmul.f32 0.01, %v260_v15  ;;  %v346_v14 = vpop.permute.xlu1 %345 }
  0xf2   :  { %v264_v19 = vpop.f32.mrb[14].mxu0 }
  0xf3   :  { %v265_v21 = vadd.f32 %v264_v19, %v92_v18  ;;  %v699_v22 = vpop.f32.mrb[15].mxu0  ;;  %787 = vmatpush3.bf16.msra.mxu1 %v786_v17  ;;  %v312_v26 = vmax.f32 %v260_v15, %v299_v20 }
  0xf4   :  { %788 = vmatprep.subr.bf16.mxu1 %v840_v37 }
  0xf5   :  { %v300_v23 = vmul.f32 0.01, %v265_v21 }
  0xf6   :  { %v269_v25 = vpop.f32.mrb[16].mxu0 }
  0xf7   :  { %v313_v27 = vmax.f32 %v265_v21, %v300_v23  ;;  %v270_v28 = vadd.f32 %v269_v25, %v97_v24  ;;  %v702_v29 = vpop.f32.mrb[17].mxu0  ;;  %v351_v21 = vpop.permute.xlu0 %350 }
  0xf9   :  { %v789_v30 = vpack.c.bf16 %v313_v27, %v312_v26  ;;  %v301_v33 = vmul.f32 0.01, %v270_v28  ;;  %v356_v27 = vpop.permute.xlu1 %355 }
  0xfa   :  { %v274_v32 = vpop.f32.mrb[18].mxu0 }
  0xfb   :  { %v275_v34 = vadd.f32 %v274_v32, %v102_v31  ;;  %v705_v35 = vpop.f32.mrb[19].mxu0  ;;  %790 = vmatpush3.bf16.msra.mxu1 %v789_v30  ;;  %v314_v40 = vmax.f32 %v270_v28, %v301_v33 }
  0xfc   :  { %791 = vmatprep.subr.bf16.mxu1 %v840_v37 }
  0xfd   :  { %v302_v36 = vmul.f32 0.01, %v275_v34 }
  0xfe   :  { %v279_v39 = vpop.f32.mrb[20].mxu0 }
  0xff   :  { %v315_v41 = vmax.f32 %v275_v34, %v302_v36  ;;  %v280_v42 = vadd.f32 %v279_v39, %v107_v38  ;;  %v708_v43 = vpop.f32.mrb[21].mxu0  ;;  %v361_v34 = vpop.permute.xlu0 %360 }
 0x101   :  { %v792_v44 = vpack.c.bf16 %v315_v41, %v314_v40  ;;  %v303_v47 = vmul.f32 0.01, %v280_v42  ;;  %v366_v41 = vpop.permute.xlu1 %365 }
 0x102   :  { %v284_v46 = vpop.f32.mrb[22].mxu0 }
 0x103   :  { %v285_v48 = vadd.f32 %v284_v46, %v112_v45  ;;  %v711_v49 = vpop.f32.mrb[23].mxu0  ;;  %793 = vmatpush3.bf16.msra.mxu1 %v792_v44  ;;  %v316_v53 = vmax.f32 %v280_v42, %v303_v47 }
 0x104   :  { %794 = vmatprep.subr.bf16.mxu1 %v840_v37 }
 0x105   :  { %v304_v50 = vmul.f32 0.01, %v285_v48 }
 0x106   :  { %v289_v52 = vpop.f32.mrb[24].mxu0 }
 0x107   :  { %v317_v54 = vmax.f32 %v285_v48, %v304_v50  ;;  %v290_v55 = vadd.f32 %v289_v52, %v117_v51  ;;  %v714_v56 = vpop.f32.mrb[25].mxu0  ;;  %v508_v50 = vld [vmem:[%s1102_s5] sm:$0x3f] }
 0x109   :  { %v305_v57 = vmul.f32 0.01, %v290_v55  ;;  %v795_v58 = vpack.c.bf16 %v317_v54, %v316_v53 }
 0x10b   :  { %796 = vmatpush3.bf16.msra.mxu1 %v795_v58  ;;  %v318_v59 = vmax.f32 %v290_v55, %v305_v57 }
 0x10c   :  { %739 = vmatprep.subr.mxu1 %v837_v2 }
 0x10f   :  { %740 = vmatpush3.msk.msra.mxu1 %vm390_vm3, %v318_v59 }
 0x110   :  { %742 = vmatmul.mubr.msk.f32.vlgmr.msra.gmra.mrb[0].mxu1 %vm368_vm4, %v319_v60 }
 0x111   :  { %744 = vmatprep.mubr.msk.f32.mxu1 %vm838_vm1, %v837_v2 }
 0x114   :  { %745 = vmatmul.mubr.msk.f32.gmra.mrb[2].mxu1 %vm368_vm4, %v320_v61 }
 0x115   :  { %747 = vmatprep.mubr.msk.f32.mxu1 %vm838_vm1, %v837_v2 }
 0x118   :  { %748 = vmatmul.mubr.msk.f32.gmra.mrb[4].mxu1 %vm368_vm4, %v321_v62 }
 0x119   :  { %750 = vmatprep.mubr.msk.f32.mxu1 %vm838_vm1, %v837_v2 }
 0x11c   :  { %751 = vmatmul.mubr.msk.f32.gmra.mrb[6].mxu1 %vm368_vm4, %v322_v63 }
 0x11d   :  { %753 = vmatprep.mubr.msk.f32.mxu1 %vm838_vm1, %v837_v2 }
 0x120   :  { %754 = vmatmul.mubr.msk.f32.gmra.mrb[8].mxu1 %vm368_vm4, %v323_v0 }
 0x121   :  { %756 = vmatprep.mubr.msk.f32.mxu1 %vm838_vm1, %v837_v2 }
 0x124   :  { %757 = vmatmul.mubr.msk.f32.gmra.mrb[10].mxu1 %vm368_vm4, %v324_v1 }
 0x125   :  { %759 = vmatprep.mubr.msk.f32.mxu1 %vm838_vm1, %v837_v2 }
 0x128   :  { %760 = vmatmul.mubr.msk.f32.gmra.mrb[12].mxu1 %vm368_vm4, %v325_v3 }
 0x1e3   :  { %v460_v5 = vpop.f32.mrb[0].mxu1 }
 0x1e4   :  { %v461_v6 = vadd.f32 %v460_v5, %v336_v4  ;;  %v743_v7 = vpop.f32.mrb[1].mxu1 }
 0x1e6   :  { %v494_v10 = vmul.f32 0.01, %v461_v6 }
 0x1e7   :  { %v465_v9 = vpop.f32.mrb[2].mxu1 }
 0x1e8   :  { %v466_v11 = vadd.f32 %v465_v9, %v341_v8  ;;  %v746_v12 = vpop.f32.mrb[3].mxu1  ;;  %v501_v16 = vmax.f32 %v461_v6, %v494_v10 }
 0x1ea   :  { %v495_v13 = vmul.f32 0.01, %v466_v11 }
 0x1eb   :  { %v470_v15 = vpop.f32.mrb[4].mxu1 }
 0x1ec   :  { %v502_v17 = vmax.f32 %v466_v11, %v495_v13  ;;  %v471_v18 = vadd.f32 %v470_v15, %v346_v14  ;;  %v749_v19 = vpop.f32.mrb[5].mxu1 }
 0x1ee   :  { %v798_v20 = vpack.c.bf16 %v502_v17, %v501_v16  ;;  %v496_v23 = vmul.f32 0.01, %v471_v18 }
 0x1ef   :  { %v475_v22 = vpop.f32.mrb[6].mxu1 }
 0x1f0   :  { %v476_v24 = vadd.f32 %v475_v22, %v351_v21  ;;  %799 = vmatpush3.bf16.msra.mxu0 %v798_v20  ;;  %v752_v25 = vpop.f32.mrb[7].mxu1  ;;  %v503_v29 = vmax.f32 %v471_v18, %v496_v23 }
 0x1f1   :  { %800 = vmatprep.subr.bf16.mxu0 %v840_v37 }
 0x1f2   :  { %v497_v26 = vmul.f32 0.01, %v476_v24 }
 0x1f3   :  { %v480_v28 = vpop.f32.mrb[8].mxu1 }
 0x1f4   :  { %v504_v30 = vmax.f32 %v476_v24, %v497_v26  ;;  %v481_v31 = vadd.f32 %v480_v28, %v356_v27  ;;  %v755_v32 = vpop.f32.mrb[9].mxu1 }
 0x1f6   :  { %v801_v33 = vpack.c.bf16 %v504_v30, %v503_v29  ;;  %v498_v36 = vmul.f32 0.01, %v481_v31 }
 0x1f7   :  { %v485_v35 = vpop.f32.mrb[10].mxu1 }
 0x1f8   :  { %v486_v38 = vadd.f32 %v485_v35, %v361_v34  ;;  %802 = vmatpush3.bf16.msra.mxu0 %v801_v33  ;;  %v758_v39 = vpop.f32.mrb[11].mxu1  ;;  %v505_v43 = vmax.f32 %v481_v31, %v498_v36 }
 0x1f9   :  { %803 = vmatprep.subr.bf16.mxu0 %v840_v37  ;;  %v513_v37 = vpop.permute.xlu0 %512 }
 0x1fa   :  { %v499_v40 = vmul.f32 0.01, %v486_v38 }
 0x1fb   :  { %v490_v42 = vpop.f32.mrb[12].mxu1 }
 0x1fc   :  { %v506_v44 = vmax.f32 %v486_v38, %v499_v40  ;;  %v491_v45 = vadd.f32 %v490_v42, %v366_v41  ;;  %v761_v46 = vpop.f32.mrb[13].mxu1 }
 0x1fe   :  { %v804_v47 = vpack.c.bf16 %v506_v44, %v505_v43  ;;  %v500_v48 = vmul.f32 0.01, %v491_v45 }
 0x200   :  { %805 = vmatpush3.bf16.msra.mxu0 %v804_v47  ;;  %v507_v49 = vmax.f32 %v491_v45, %v500_v48 }
 0x201   :  { %774 = vmatprep.subr.mxu0 %v837_v2 }
 0x204   :  { %775 = vmatpush3.msk.msra.mxu0 %vm519_vm5, %v507_v49 }
 0x205   :  { %777 = vmatmul.mubr.msk.f32.vlgmr.msra.gmra.mrb[26].mxu0 %vm515_vm6, %v508_v50 }
 0x2d8   :  { %v589_v51 = vpop.f32.mrb[26].mxu0 }
 0x2d9   :  { %v590_v52 = vadd.f32 %v589_v51, %v513_v37  ;;  %v778_v53 = vpop.f32.mrb[27].mxu0 }
 0x2db   :  { %593 = vst [vmem:[#allocation2] sm:$0x3f] %v590_v52 }
 0x2dc   :  { %824 = shalt.err (!%p821_p4)
}
 0x2dd   :  { %s825_s12 = scalar_lea.hbm %s1104_s7, 128 }
 0x2de   :  { %p826_p5 = scmp.ne.s32.totalorder %s1104_s7, %s825_s12  ;;  %p829_p6 = scmp.lt.u32.totalorder %s825_s12, %s1104_s7 }
 0x2e0   :  { %p831_p7 = pnand %p829_p6, %p826_p5 }
 0x2e2   :  { %834 = shalt.err (!%p831_p7)
}
 0x2e3   :  { %603 = dma.vmem_to_hbm [thread:$0]  %s601_s9, 128, %s1104_s7, [#allocation3]  }
 0x2e4   :  { %835 = dma.done.wait [#allocation3], 128  }
 0x2e5   :  { %836 = vsyncadd [#allocation3], 4294967168 }
 0x2e6   :  { %607 = vsyncpa [#allocation3], 1 }

</bundles_post_ra>
